<compile_context>
chip_gen: v6e
topology: v6e:2x2x1
jax: 0.10.0
libtpu: 0.0.40
codegen_flags: <defaults>
</compile_context>

<pallas_src>
import jax
import jax.numpy as jnp
from jax.experimental import pallas as pl
from jax.experimental.pallas import tpu as pltpu


def _extrap_kernel(x_ref, w2_ref, b_ref, o_ref):
    # x_ref:  (B, t * n_nodes * C)        flattened input, lane-dense
    # w2_ref: (n_nodes * C, F * C)        channel-expanded weight (VMEM-resident)
    # b_ref:  (1, F * C)                  channel-repeated bias
    # o_ref:  (B, (t + t_extra) * n_nodes * C)
    in_w = x_ref.shape[1]          # t * n_nodes * C
    nc = w2_ref.shape[0]           # n_nodes * C

    # 1) pass-through: out[:, :t*n_nodes*C] = x  (replaces jnp.concatenate)
    #    Single contiguous lane-dense copy of the whole batch.
    o_ref[:, :in_w] = x_ref[...]

    # 2) extrapolation from the last timestep, one MXU push for the batch.
    #    x_last_flat[b, i*C + c] = x[b, t-1, i, c]; the kron-expanded weight
    #    makes (x_last_flat @ W2)[b, f*C + c] = sum_i W[f, i] * x[b, t-1, i, c],
    #    which is exactly the reference's reshape+permute layout, row-major.
    x_last = x_ref[:, in_w - nc:in_w]                       # (B, n_nodes*C)
    y = jnp.dot(x_last, w2_ref[...],
                preferred_element_type=jnp.float32,
                precision=jax.lax.Precision.HIGHEST)        # (B, F*C)
    o_ref[:, in_w:] = jnp.maximum(y + b_ref[...], 0.0).astype(o_ref.dtype)


class SimpleLinearExtrapolationPallas:
    """JAX/Pallas port of the PyTorch SimpleLinearExtrapolation module."""

    def __init__(self, n_nodes, t_in, T, key):
        assert T > t_in, "t_in > T"
        self.n_nodes = n_nodes
        self.t_in = t_in
        self.T = T
        out_features = (T - t_in) * n_nodes
        # Deterministic init mirroring nn.Linear: U(-1/sqrt(K), 1/sqrt(K)).
        kw, kb = jax.random.split(key)
        bound = 1.0 / (n_nodes ** 0.5)
        self.weight = jax.random.uniform(
            kw, (out_features, n_nodes), jnp.float32, -bound, bound)
        self.bias = jax.random.uniform(
            kb, (out_features,), jnp.float32, -bound, bound)
        # Cache of channel-expanded parameters, keyed by n_channels.
        self._expanded_c = None
        self._expanded = None

    def _expanded_params(self, n_channels):
        # One-time parameter preprocessing (like weight packing), cached.
        if self._expanded_c != n_channels:
            eye = jnp.eye(n_channels, dtype=self.weight.dtype)
            # W2[i*C + c, f*C + c'] = W[f, i] * delta(c, c')
            w2 = jnp.kron(self.weight.T, eye)                 # (n_nodes*C, F*C)
            b2 = jnp.repeat(self.bias, n_channels)[None, :]   # (1, F*C) lane-dense
            self._expanded = (w2, b2)
            self._expanded_c = n_channels
        return self._expanded

    def __call__(self, x):
        B, t, n_nodes, n_channels = x.shape
        assert n_nodes == self.n_nodes
        t_extra = self.T - self.t_in
        t_out = t + t_extra
        nc = n_nodes * n_channels
        in_w = t * nc
        out_w = t_out * nc
        fc_w = t_extra * nc                                   # F * C
        itemsize = 4  # f32

        w2, b2 = self._expanded_params(n_channels)

        # Free row-major reshape: lane dim becomes t*n_nodes*C (512 here).
        x_flat = x.reshape(B, in_w)

        cost = pl.CostEstimate(
            flops=2 * B * nc * fc_w,
            transcendentals=0,
            bytes_accessed=itemsize * (B * in_w          # x
                                       + nc * fc_w       # W2
                                       + fc_w            # bias
                                       + B * out_w))     # out

        out_flat = pl.pallas_call(
            _extrap_kernel,
            out_shape=jax.ShapeDtypeStruct((B, out_w), x.dtype),
            grid=(1,),   # whole batch in one step: avoids per-step overhead
            in_specs=[
                pl.BlockSpec((B, in_w), lambda i: (0, 0)),
                pl.BlockSpec((nc, fc_w), lambda i: (0, 0)),
                pl.BlockSpec((1, fc_w), lambda i: (0, 0)),
            ],
            out_specs=pl.BlockSpec((B, out_w), lambda i: (0, 0)),
            compiler_params=pltpu.CompilerParams(
                dimension_semantics=("arbitrary",)),
            cost_estimate=cost,
        )(x_flat, w2, b2)

        # TODO(synk): for large B, block the batch over a "parallel" grid axis
        # with a few hundred KiB of traffic per step so v7x's two TCs both get
        # real work; at B=2 a single step is strictly faster.
        return out_flat.reshape(B, t_out, n_nodes, n_channels)


if __name__ == "__main__":
    key = jax.random.PRNGKey(0)
    k_param, k_x = jax.random.split(key)

    # Small shapes: B=2, t=t_in=8, n_nodes=16, n_channels=4, T=12.
    B, t_in, T, n_nodes, n_channels = 2, 8, 12, 16, 4
    model = SimpleLinearExtrapolationPallas(n_nodes, t_in, T, k_param)

    x = jax.random.normal(k_x, (B, t_in, n_nodes, n_channels), jnp.float32)

    out = model(x)
    out = jax.block_until_ready(out)

    # Pure-JAX reference mirroring the PyTorch module exactly.
    T_extra = T - t_in
    x_last_t = jnp.swapaxes(x[:, -1], -1, -2)                 # (B, C, n_nodes)
    fc = jnp.einsum("bcn,fn->bcf", x_last_t, model.weight,
                    precision=jax.lax.Precision.HIGHEST) + model.bias
    ref_y = jnp.maximum(
        jnp.transpose(fc.reshape(B, n_channels, T_extra, n_nodes),
                      (0, 2, 3, 1)), 0.0)                     # (B, T_extra, n_nodes, C)
    ref = jnp.concatenate([x, ref_y], axis=1)

    assert out.shape == (B, t_in + T_extra, n_nodes, n_channels), out.shape
    assert jnp.allclose(out, ref, atol=1e-5, rtol=1e-5)
    print("KERNEL_OK")
</pallas_src>

<mosaic_0001>
module attributes {stable_mosaic.version = 11 : i64} {
  func.func @_extrap_kernel(%arg0: i32, %arg1: memref<2x512xf32, #tpu.memory_space<vmem>>, %arg2: memref<64x256xf32, #tpu.memory_space<vmem>>, %arg3: memref<1x256xf32, #tpu.memory_space<vmem>>, %arg4: memref<2x768xf32, #tpu.memory_space<vmem>>) attributes {dimension_semantics = [#tpu.dimension_semantics<arbitrary>], iteration_bounds = array<i64: 1>, scalar_prefetch = 0 : i64, scratch_operands = 0 : i64, tpu.core_type = #tpu.core_type<tc>, window_params = [{pipeline_mode = #tpu.pipeline_mode<synchronous>, transform_indices = @transform_0, window_bounds = array<i64: 2, 512>}, {pipeline_mode = #tpu.pipeline_mode<synchronous>, transform_indices = @transform_1, window_bounds = array<i64: 64, 256>}, {pipeline_mode = #tpu.pipeline_mode<synchronous>, transform_indices = @transform_2, window_bounds = array<i64: 1, 256>}, {pipeline_mode = #tpu.pipeline_mode<synchronous>, transform_indices = @transform_3, window_bounds = array<i64: 2, 768>}]} {
    %c0 = arith.constant 0 : index
    %c0_0 = arith.constant 0 : index
    %0 = vector.load %arg1[%c0, %c0_0] : memref<2x512xf32, #tpu.memory_space<vmem>>, vector<2x512xf32>
    %c0_1 = arith.constant 0 : index
    %c0_2 = arith.constant 0 : index
    %1 = vector.load %arg4[%c0_1, %c0_2] : memref<2x768xf32, #tpu.memory_space<vmem>>, vector<2x512xf32>
    tpu.vector_store %arg4[%c0_1, %c0_2], %0 {strides = array<i32>} : memref<2x768xf32, #tpu.memory_space<vmem>>, vector<2x512xf32>,
    %c0_3 = arith.constant 0 : index
    %c448 = arith.constant 448 : index
    %2 = vector.load %arg1[%c0_3, %c448] : memref<2x512xf32, #tpu.memory_space<vmem>>, vector<2x64xf32>
    %c0_4 = arith.constant 0 : index
    %c0_5 = arith.constant 0 : index
    %3 = vector.load %arg2[%c0_4, %c0_5] : memref<64x256xf32, #tpu.memory_space<vmem>>, vector<64x256xf32>
    %cst = arith.constant dense<0.000000e+00> : vector<2x256xf32>
    %4 = tpu.matmul %2, %3, %cst {dimension_numbers = #tpu.dot_dimension_numbers<[1], [0], [0], [1], [0, 0, 1, 1], [], []>, precision = #tpu.contract_precision<fp32>} : vector<2x64xf32>, vector<64x256xf32>, vector<2x256xf32> -> vector<2x256xf32>
    %c0_6 = arith.constant 0 : index
    %c0_7 = arith.constant 0 : index
    %5 = vector.load %arg3[%c0_6, %c0_7] : memref<1x256xf32, #tpu.memory_space<vmem>>, vector<1x256xf32>
    %6 = vector.broadcast %5 : vector<1x256xf32> to vector<2x256xf32>
    %7 = arith.addf %4, %6 : vector<2x256xf32>
    %cst_8 = arith.constant 0.000000e+00 : f32
    %8 = vector.broadcast %cst_8 : f32 to vector<2x256xf32>
    %9 = arith.maximumf %7, %8 : vector<2x256xf32>
    %c0_9 = arith.constant 0 : index
    %c512 = arith.constant 512 : index
    %10 = vector.load %arg4[%c0_9, %c512] : memref<2x768xf32, #tpu.memory_space<vmem>>, vector<2x256xf32>
    tpu.vector_store %arg4[%c0_9, %c512], %9 {strides = array<i32>} : memref<2x768xf32, #tpu.memory_space<vmem>>, vector<2x256xf32>,
    return
  }
  func.func @transform_0(%arg0: i32) -> (i32, i32) {
    %c0_i32 = arith.constant 0 : i32
    %c0_i32_0 = arith.constant 0 : i32
    %c0_i32_1 = arith.constant 0 : i32
    return %c0_i32, %c0_i32_0 : i32, i32
  }
  func.func @transform_1(%arg0: i32) -> (i32, i32) {
    %c0_i32 = arith.constant 0 : i32
    %c0_i32_0 = arith.constant 0 : i32
    %c0_i32_1 = arith.constant 0 : i32
    return %c0_i32, %c0_i32_0 : i32, i32
  }
  func.func @transform_2(%arg0: i32) -> (i32, i32) {
    %c0_i32 = arith.constant 0 : i32
    %c0_i32_0 = arith.constant 0 : i32
    %c0_i32_1 = arith.constant 0 : i32
    return %c0_i32, %c0_i32_0 : i32, i32
  }
  func.func @transform_3(%arg0: i32) -> (i32, i32) {
    %c0_i32 = arith.constant 0 : i32
    %c0_i32_0 = arith.constant 0 : i32
    %c0_i32_1 = arith.constant 0 : i32
    return %c0_i32, %c0_i32_0 : i32, i32
  }
}

</mosaic_0001>

<bundles_post_ra>
// kernel: tpu_custom_call.1
= control target key start
LH: loop header
LB: loop body
LE: loop exit
PB: predicated region body
PF: predicated region fallthrough
CT: control target
= control target key end

     0   :  { %8 = vsyncpa [#allocation3], 0  ;;  %s1128_s0 = inlined_call_operand.hbm [shape: f32[2,512], index: 0, kind: input, shape index: {}]   ;;  %s1129_s1 = inlined_call_operand.hbm [shape: f32[64,256], index: 1, kind: input, shape index: {}]   ;;  %s1130_s2 = inlined_call_operand.vmem [shape: f32[1,256], index: 2, kind: input, shape index: {}]   ;;  %s1131_s3 = inlined_call_operand.hbm [shape: f32[2,768], index: 3, kind: output, shape index: {}]  }
   0x1   :  { %9 = vsyncpa [#allocation6], 0 }
   0x2   :  { %10 = vsyncpa [#allocation4], 0  ;;  %s837_s12 = smov [#allocation2]   ;;  %s838_s14 = smov [#allocation5]  }
   0x3   :  { %s17_s13 = sshll.u32 %s837_s12, 4  ;;  %s26_s15 = sshll.u32 %s838_s14, 4  ;;  %s18_s13 = int_to_ptr.vmem [resolvable:$true] %s17_s13  ;;  %s27_s15 = int_to_ptr.vmem [resolvable:$true] %s26_s15 }
   0x4   :  { %s779_s16 = scalar_lea.vmem %s18_s13, 128  ;;  %p784_p1 = scmp.lt.s32.totalorder %s18_s13, %s18_s13 }
   0x5   :  { %p780_p0 = scmp.ne.s32.totalorder %s18_s13, %s779_s16  ;;  %p785_p2 = scmp.lt.s32.totalorder %s779_s16, %s779_s16 }
   0x7   :  { %p786_p3 = por %p785_p2, %p784_p1 }
   0x9   :  { %p787_p4 = pnand %p786_p3, %p780_p0 }
   0xb   :  { %790 = shalt.err (!%p787_p4)
}
   0xc   :  { %20 = dma.hbm_to_vmem [thread:$0]  %s1128_s0, 128, %s18_s13, [#allocation3]  }
   0xd   :  { %s799_s19 = scalar_lea.vmem %s27_s15, 2048  ;;  %p804_p6 = scmp.lt.s32.totalorder %s27_s15, %s27_s15 }
   0xe   :  { %p800_p5 = scmp.ne.s32.totalorder %s27_s15, %s799_s19  ;;  %p805_p7 = scmp.lt.s32.totalorder %s799_s19, %s799_s19 }
  0x10   :  { %p806_p8 = por %p805_p7, %p804_p6 }
  0x12   :  { %p807_p9 = pnand %p806_p8, %p800_p5 }
  0x14   :  { %810 = shalt.err (!%p807_p9)
}
  0x15   :  { %s839_s20 = smov 256   ;;  %s840_s21 = smov 16  }
  0x16   :  { %32 = dma.hbm_to_vmem [thread:$0]  %s1129_s1, 2048, %s27_s15, [#allocation6], %s839_s20, %s839_s20, %s840_s21  }
  0x17   :  { %831 = dma.done.wait [#allocation3], 128  }
  0x18   :  { %832 = vsyncadd [#allocation3], 4294967168 }
  0x19   :  { %833 = dma.done.wait [#allocation6], 2048  }
  0x1a   :  { %834 = vsyncadd [#allocation6], 4294965248  ;;  %v841_v0 = vmov 0.0   ;;  %v59_v2 = vld [vmem:[#allocation5 + $0x78] sm:$0xff]  ;;  %v58_v3 = vld [vmem:[#allocation5 + $0x70] sm:$0xff]  ;;  %s842_s0 = smov 64  }
  0x1b   :  { %321 = vmatprep.mubr.f32.mxu1 %v841_v0  ;;  %165 = vmatprep.mubr.f32.mxu0 %v841_v0  ;;  %v762_v1 = vld.sshfl [vmem:[#allocation2 + $0x6] sm:$0x3 pattern:$0x76325410]  ;;  %v872_v4 = vand.u32 4294901760, %v59_v2  ;;  %v874_v5 = vand.u32 4294901760, %v58_v3 }
  0x1c   :  { %80 = vrot.lane.b32.xlu0 %v762_v1, %s842_s0  ;;  %v57_v6 = vld [vmem:[#allocation5 + $0x68] sm:$0xff]  ;;  %v56_v7 = vld [vmem:[#allocation5 + $0x60] sm:$0xff]  ;;  %v55_v8 = vld [vmem:[#allocation5 + $0x58] sm:$0xff]  ;;  %vm82_vm0 = vcmask 523264  }
  0x1d   :  { %v876_v9 = vand.u32 4294901760, %v57_v6  ;;  %v878_v10 = vand.u32 4294901760, %v56_v7  ;;  %v880_v11 = vand.u32 4294901760, %v55_v8  ;;  %v54_v12 = vld [vmem:[#allocation5 + $0x50] sm:$0xff]  ;;  %v53_v13 = vld [vmem:[#allocation5 + $0x48] sm:$0xff]  ;;  %v52_v14 = vld [vmem:[#allocation5 + $0x40] sm:$0xff]  ;;  %v883_v15 = vsub.f32 %v59_v2, %v872_v4  ;;  %102 = vmatprep.subr.mxu0 %v872_v4 }
  0x1e   :  { %v886_v16 = vsub.f32 %v58_v3, %v874_v5  ;;  %v888_v17 = vand.u32 4294901760, %v54_v12  ;;  %v890_v18 = vand.u32 4294901760, %v53_v13  ;;  %v902_v22 = vand.u32 4294901760, %v52_v14  ;;  %104 = vmatpush1.msra.mxu0 %v874_v5  ;;  %v51_v39 = vld [vmem:[#allocation5 + $0x38] sm:$0xff]  ;;  %v50_v40 = vld [vmem:[#allocation5 + $0x30] sm:$0xff]  ;;  %v49_v45 = vld [vmem:[#allocation5 + $0x28] sm:$0xff] }
  0x1f   :  { %v894_v19 = vsub.f32 %v57_v6, %v876_v9  ;;  %v897_v20 = vsub.f32 %v56_v7, %v878_v10  ;;  %v900_v21 = vsub.f32 %v55_v8, %v880_v11  ;;  %v195_v23 = vand.u32 4294901760, %v883_v15  ;;  %106 = vmatprep.subr.mxu0 %v876_v9  ;;  %v48_v46 = vld [vmem:[#allocation5 + $0x20] sm:$0xff]  ;;  %v47_v47 = vld [vmem:[#allocation5 + $0x18] sm:$0xff]  ;;  %v46_v52 = vld [vmem:[#allocation5 + $0x10] sm:$0xff] }
  0x20   :  { %v201_v24 = vand.u32 4294901760, %v886_v16  ;;  %v908_v25 = vsub.f32 %v54_v12, %v888_v17  ;;  %v911_v26 = vsub.f32 %v53_v13, %v890_v18  ;;  %v918_v30 = vsub.f32 %v52_v14, %v902_v22  ;;  %108 = vmatpush1.msra.mxu0 %v878_v10  ;;  %v45_v53 = vld [vmem:[#allocation5 + $0x8] sm:$0xff]  ;;  %v44_v58 = vld [vmem:[#allocation5] sm:$0xff] }
  0x21   :  { %v207_v27 = vand.u32 4294901760, %v894_v19  ;;  %v213_v28 = vand.u32 4294901760, %v897_v20  ;;  %v219_v29 = vand.u32 4294901760, %v900_v21  ;;  %v196_v31 = vsub.f32 %v883_v15, %v195_v23  ;;  %110 = vmatprep.subr.mxu0 %v880_v11 }
  0x22   :  { %v202_v32 = vsub.f32 %v886_v16, %v201_v24  ;;  %v225_v33 = vand.u32 4294901760, %v908_v25  ;;  %v231_v34 = vand.u32 4294901760, %v911_v26  ;;  %v237_v38 = vand.u32 4294901760, %v918_v30  ;;  %112 = vmatpush1.msra.mxu0 %v888_v17 }
  0x23   :  { %v208_v35 = vsub.f32 %v894_v19, %v207_v27  ;;  %v214_v36 = vsub.f32 %v897_v20, %v213_v28  ;;  %v220_v37 = vsub.f32 %v900_v21, %v219_v29  ;;  %v197_v41 = vand.u32 4294901760, %v196_v31  ;;  %114 = vmatprep.subr.mxu0 %v890_v18 }
  0x24   :  { %v203_v42 = vand.u32 4294901760, %v202_v32  ;;  %v226_v43 = vsub.f32 %v908_v25, %v225_v33  ;;  %v232_v44 = vsub.f32 %v911_v26, %v231_v34  ;;  %v238_v51 = vsub.f32 %v918_v30, %v237_v38  ;;  %116 = vmatpush1.msra.mxu0 %v902_v22 }
  0x25   :  { %v209_v48 = vand.u32 4294901760, %v208_v35  ;;  %v215_v49 = vand.u32 4294901760, %v214_v36  ;;  %v221_v50 = vand.u32 4294901760, %v220_v37  ;;  %198 = vmatprep.subr.mxu1 %v197_v41  ;;  %v952_v56 = vand.u32 4294901760, %v51_v39 }
  0x26   :  { %v227_v54 = vand.u32 4294901760, %v226_v43  ;;  %v233_v55 = vand.u32 4294901760, %v232_v44  ;;  %v954_v57 = vand.u32 4294901760, %v50_v40  ;;  %204 = vmatpush1.msra.mxu1 %v203_v42  ;;  %v239_v59 = vand.u32 4294901760, %v238_v51 }
  0x27   :  { %v956_v60 = vand.u32 4294901760, %v49_v45  ;;  %v958_v61 = vand.u32 4294901760, %v48_v46  ;;  %v960_v62 = vand.u32 4294901760, %v47_v47  ;;  %210 = vmatprep.subr.mxu1 %v209_v48  ;;  %v963_v63 = vsub.f32 %v51_v39, %v952_v56  ;;  %118 = vmatprep.subr.mxu0 %v952_v56 }
  0x28   :  { %v966_v1 = vsub.f32 %v50_v40, %v954_v57  ;;  %v968_v2 = vand.u32 4294901760, %v46_v52  ;;  %v970_v3 = vand.u32 4294901760, %v45_v53  ;;  %216 = vmatpush1.msra.mxu1 %v215_v49  ;;  %v982_v12 = vand.u32 4294901760, %v44_v58  ;;  %120 = vmatpush1.msra.mxu0 %v954_v57 }
  0x29   :  { %v974_v6 = vsub.f32 %v49_v45, %v956_v60  ;;  %v977_v7 = vsub.f32 %v48_v46, %v958_v61  ;;  %v980_v8 = vsub.f32 %v47_v47, %v960_v62  ;;  %222 = vmatprep.subr.mxu1 %v221_v50  ;;  %v243_v13 = vand.u32 4294901760, %v963_v63  ;;  %122 = vmatprep.subr.mxu0 %v956_v60 }
  0x2a   :  { %v249_v14 = vand.u32 4294901760, %v966_v1  ;;  %v988_v31 = vsub.f32 %v46_v52, %v968_v2  ;;  %v991_v32 = vsub.f32 %v45_v53, %v970_v3  ;;  %228 = vmatpush1.msra.mxu1 %v227_v54  ;;  %v998_v39 = vsub.f32 %v44_v58, %v982_v12  ;;  %124 = vmatpush1.msra.mxu0 %v958_v61 }
  0x2b   :  { %v255_v35 = vand.u32 4294901760, %v974_v6  ;;  %v261_v36 = vand.u32 4294901760, %v977_v7  ;;  %v267_v37 = vand.u32 4294901760, %v980_v8  ;;  %234 = vmatprep.subr.mxu1 %v233_v55  ;;  %v244_v40 = vsub.f32 %v963_v63, %v243_v13  ;;  %126 = vmatprep.subr.mxu0 %v960_v62 }
  0x2c   :  { %v250_v41 = vsub.f32 %v966_v1, %v249_v14  ;;  %v273_v42 = vand.u32 4294901760, %v988_v31  ;;  %v279_v43 = vand.u32 4294901760, %v991_v32  ;;  %240 = vmatpush1.msra.mxu1 %v239_v59  ;;  %v285_v47 = vand.u32 4294901760, %v998_v39  ;;  %128 = vmatpush1.msra.mxu0 %v968_v2 }
  0x2d   :  { %v256_v44 = vsub.f32 %v974_v6, %v255_v35  ;;  %v262_v45 = vsub.f32 %v977_v7, %v261_v36  ;;  %v268_v46 = vsub.f32 %v980_v8, %v267_v37  ;;  %v245_v48 = vand.u32 4294901760, %v244_v40  ;;  %130 = vmatprep.subr.mxu0 %v970_v3 }
  0x2e   :  { %v251_v49 = vand.u32 4294901760, %v250_v41  ;;  %v274_v50 = vsub.f32 %v988_v31, %v273_v42  ;;  %v280_v51 = vsub.f32 %v991_v32, %v279_v43  ;;  %v286_v54 = vsub.f32 %v998_v39, %v285_v47  ;;  %132 = vmatpush1.msra.mxu0 %v982_v12 }
  0x2f   :  { %v257_v52 = vand.u32 4294901760, %v256_v44  ;;  %v263_v53 = vand.u32 4294901760, %v262_v45  ;;  %246 = vmatprep.subr.mxu1 %v245_v48  ;;  %v269_v55 = vand.u32 4294901760, %v268_v46  ;;  %347 = vmatprep.subr.mxu0 %v883_v15 }
  0x30   :  { %252 = vmatpush1.msra.mxu1 %v251_v49  ;;  %v275_v58 = vand.u32 4294901760, %v274_v50  ;;  %v281_v59 = vand.u32 4294901760, %v280_v51  ;;  %v287_v40 = vand.u32 4294901760, %v286_v54 }
  0x31   :  { %258 = vmatprep.subr.mxu1 %v257_v52 }
  0x32   :  { %264 = vmatpush1.msra.mxu1 %v263_v53 }
  0x33   :  { %270 = vmatprep.subr.mxu1 %v269_v55 }
  0x34   :  { %276 = vmatpush1.msra.mxu1 %v275_v58 }
  0x35   :  { %282 = vmatprep.subr.mxu1 %v281_v59 }
  0x36   :  { %288 = vmatpush1.msra.mxu1 %v287_v40 }
  0x37   :  { %451 = vmatprep.subr.mxu1 %v872_v4 }
  0x8e   :  { %v81_v41 = vpop.permute.xlu0 %80 }
  0x8f   :  { %v83_v44 = vsel %vm82_vm0, %v81_v41, 0 }
  0x90   :  { %v1034_v45 = vand.u32 4294901760, %v83_v44 }
  0x92   :  { %v167_v46 = vsub.f32 %v83_v44, %v1034_v45  ;;  %323 = vmatmul.mubr.f32.vlgmr.msra.gmra.mxu1 %v1034_v45 }
  0x93   :  { %453 = vmatpush1.msra.mxu1 %v874_v5  ;;  %514 = vmatprep.mubr.f32.mxu1 %v841_v0 }
  0x94   :  { %v168_v48 = vand.u32 4294901760, %v167_v46  ;;  %455 = vmatprep.subr.mxu1 %v876_v9 }
  0x95   :  { %457 = vmatpush1.msra.mxu1 %v878_v10 }
  0x96   :  { %459 = vmatprep.subr.mxu1 %v880_v11  ;;  %v169_v49 = vsub.f32 %v167_v46, %v168_v48 }
  0x97   :  { %461 = vmatpush1.msra.mxu1 %v888_v17 }
  0x98   :  { %463 = vmatprep.subr.mxu1 %v890_v18  ;;  %v170_v50 = vand.u32 4294901760, %v169_v49 }
  0x99   :  { %465 = vmatpush1.msra.mxu1 %v902_v22 }
  0x9a   :  { %467 = vmatprep.subr.mxu1 %v952_v56  ;;  %171 = vmatmul.mubr.f32.vlgmr.msra.gmra.mxu0 %v170_v50 }
  0x9b   :  { %350 = vmatpush1.msra.mxu0 %v886_v16  ;;  %469 = vmatpush1.msra.mxu1 %v954_v57 }
  0x9c   :  { %353 = vmatprep.subr.mxu0 %v894_v19  ;;  %471 = vmatprep.subr.mxu1 %v956_v60 }
  0x9d   :  { %356 = vmatpush1.msra.mxu0 %v897_v20  ;;  %473 = vmatpush1.msra.mxu1 %v958_v61 }
  0x9e   :  { %359 = vmatprep.subr.mxu0 %v900_v21  ;;  %475 = vmatprep.subr.mxu1 %v960_v62 }
  0x9f   :  { %362 = vmatpush1.msra.mxu0 %v908_v25  ;;  %477 = vmatpush1.msra.mxu1 %v968_v2 }
  0xa0   :  { %365 = vmatprep.subr.mxu0 %v911_v26  ;;  %479 = vmatprep.subr.mxu1 %v970_v3 }
  0xa1   :  { %368 = vmatpush1.msra.mxu0 %v918_v30  ;;  %481 = vmatpush1.msra.mxu1 %v982_v12 }
  0xa2   :  { %371 = vmatprep.subr.mxu0 %v963_v63  ;;  %518 = vmatmul.mubr.f32.vlgmr.msra.gmra.mxu1 %v168_v48 }
  0xa3   :  { %661 = vmatprep.subr.mxu1 %v872_v4  ;;  %374 = vmatpush1.msra.mxu0 %v966_v1  ;;  %v62_v4 = vlaneseq }
  0xa4   :  { %663 = vmatpush1.msra.mxu1 %v874_v5  ;;  %377 = vmatprep.subr.mxu0 %v974_v6 }
  0xa5   :  { %665 = vmatprep.subr.mxu1 %v876_v9  ;;  %380 = vmatpush1.msra.mxu0 %v977_v7  ;;  %v63_v5 = vshrl.u32 %v62_v4, 7 }
  0xa6   :  { %667 = vmatpush1.msra.mxu1 %v878_v10  ;;  %383 = vmatprep.subr.mxu0 %v980_v8  ;;  %v60_v10 = vld [vmem:[%s1130_s2] sm:$0x3]  ;;  %s843_s2 = smov [#allocation7]  }
  0xa7   :  { %669 = vmatprep.subr.mxu1 %v880_v11  ;;  %386 = vmatpush1.msra.mxu0 %v988_v31  ;;  %v64_v9 = vsub.s32 0, %v63_v5  ;;  %v68_v11 = vsub.s32 1, %v63_v5  ;;  %s752_s25 = sshll.u32 %s843_s2, 4  ;;  %s753_s25 = int_to_ptr.vmem [resolvable:$true] %s752_s25 }
  0xa8   :  { %671 = vmatpush1.msra.mxu1 %v888_v17  ;;  %389 = vmatprep.subr.mxu0 %v991_v32  ;;  %s811_s26 = scalar_lea.vmem %s753_s25, 192  ;;  %p816_p11 = scmp.lt.s32.totalorder %s753_s25, %s753_s25 }
  0xa9   :  { %673 = vmatprep.subr.mxu1 %v890_v18  ;;  %392 = vmatpush1.msra.mxu0 %v998_v39  ;;  %v65_v16 = vrot.slane %v60_v10, %v64_v9  ;;  %v69_v17 = vrot.slane %v60_v10, %v68_v11  ;;  %p812_p10 = scmp.ne.s32.totalorder %s753_s25, %s811_s26  ;;  %p817_p12 = scmp.lt.s32.totalorder %s811_s26, %s811_s26 }
  0xaa   :  { %425 = vmatprep.mubr.f32.mxu0 %v841_v0  ;;  %675 = vmatpush1.msra.mxu1 %v902_v22 }
  0xab   :  { %428 = vmatmul.mubr.f32.vlgmr.msra.gmra.mxu0 %v167_v46  ;;  %543 = vmatprep.subr.mxu0 %v195_v23  ;;  %p818_p13 = por %p817_p12, %p816_p11 }
  0xac   :  { %677 = vmatprep.subr.mxu1 %v952_v56  ;;  %547 = vmatpush1.msra.mxu0 %v201_v24 }
  0xad   :  { %679 = vmatpush1.msra.mxu1 %v954_v57  ;;  %551 = vmatprep.subr.mxu0 %v207_v27  ;;  %p819_p0 = pnand %p818_p13, %p812_p10 }
  0xae   :  { %681 = vmatprep.subr.mxu1 %v956_v60  ;;  %555 = vmatpush1.msra.mxu0 %v213_v28 }
  0xaf   :  { %683 = vmatpush1.msra.mxu1 %v958_v61  ;;  %559 = vmatprep.subr.mxu0 %v219_v29 }
  0xb0   :  { %685 = vmatprep.subr.mxu1 %v960_v62  ;;  %563 = vmatpush1.msra.mxu0 %v225_v33 }
  0xb1   :  { %687 = vmatpush1.msra.mxu1 %v968_v2  ;;  %567 = vmatprep.subr.mxu0 %v231_v34 }
  0xb2   :  { %689 = vmatprep.subr.mxu1 %v970_v3  ;;  %571 = vmatpush1.msra.mxu0 %v237_v38 }
  0xb3   :  { %691 = vmatpush1.msra.mxu1 %v982_v12  ;;  %724 = vmatprep.mubr.f32.mxu1 %v841_v0 }
  0xb4   :  { %575 = vmatprep.subr.mxu0 %v243_v13  ;;  %726 = vmatmul.mubr.f32.vlgmr.msra.gmra.mxu1 %v1034_v45 }
  0xb5   :  { %579 = vmatpush1.msra.mxu0 %v249_v14  ;;  %636 = vmatprep.mubr.f32.mxu0 %v841_v0  ;;  %v41_v0 = vld [vmem:[#allocation2] sm:$0xff] }
  0xb6   :  { %583 = vmatprep.subr.mxu0 %v255_v35  ;;  %42 = vst [vmem:[#allocation7] sm:$0xff] %v41_v0 }
  0xb7   :  { %587 = vmatpush1.msra.mxu0 %v261_v36 }
  0xb8   :  { %591 = vmatprep.subr.mxu0 %v267_v37 }
  0xb9   :  { %595 = vmatpush1.msra.mxu0 %v273_v42 }
  0xba   :  { %599 = vmatprep.subr.mxu0 %v279_v43 }
  0xbb   :  { %603 = vmatpush1.msra.mxu0 %v285_v47 }
  0xbc   :  { %638 = vmatmul.mubr.f32.vlgmr.msra.gmra.mxu0 %v1034_v45 }
 0x152   :  { %v324_v18 = vpop.f32.mrf.mxu1 }
 0x154   :  { %v326_v23 = vpop.f32.mrf.mxu1 }
 0x15a   :  { %v172_v15 = vpop.f32.mrf.mxu0 }
 0x15b   :  { %v173_v20 = vadd.f32 %v172_v15, %v65_v16 }
 0x15c   :  { %v174_v19 = vpop.f32.mrf.mxu0 }
 0x15d   :  { %v175_v22 = vadd.f32 %v174_v19, %v69_v17  ;;  %v325_v24 = vadd.f32 %v324_v18, %v173_v20 }
 0x15f   :  { %v327_v28 = vadd.f32 %v326_v23, %v175_v22 }
 0x162   :  { %v519_v25 = vpop.f32.mrf.mxu1 }
 0x164   :  { %v521_v30 = vpop.f32.mrf.mxu1 }
 0x16b   :  { %v429_v21 = vpop.f32.mrf.mxu0 }
 0x16c   :  { %v430_v27 = vadd.f32 %v429_v21, %v325_v24 }
 0x16d   :  { %v431_v26 = vpop.f32.mrf.mxu0 }
 0x16e   :  { %v432_v29 = vadd.f32 %v431_v26, %v327_v28  ;;  %v520_v33 = vadd.f32 %v519_v25, %v430_v27 }
 0x170   :  { %v522_v57 = vadd.f32 %v521_v30, %v432_v29 }
 0x174   :  { %v727_v34 = vpop.f32.mrf.mxu1 }
 0x176   :  { %v729_v63 = vpop.f32.mrf.mxu1 }
 0x17c   :  { %v639_v38 = vpop.f32.mrf.mxu0 }
 0x17d   :  { %v640_v56 = vadd.f32 %v639_v38, %v520_v33 }
 0x17e   :  { %v641_v60 = vpop.f32.mrf.mxu0 }
 0x17f   :  { %v728_v61 = vadd.f32 %v727_v34, %v640_v56  ;;  %v642_v62 = vadd.f32 %v641_v60, %v522_v57 }
 0x181   :  { %v730_v1 = vadd.f32 %v729_v63, %v642_v62  ;;  %v732_v2 = vmax.f32 %v728_v61, 0.0 }
 0x183   :  { %v733_v3 = vmax.f32 %v730_v1, 0.0 }
 0x185   :  { %v736_v6 = vcombine.low %v732_v2, %v733_v3 }
 0x187   :  { %763 = vst.sshfl [vmem:[#allocation7 + $0x8] sm:$0x33 pattern:$0x76325410] %v736_v6 }
 0x188   :  { %822 = shalt.err (!%p819_p0)
}
 0x189   :  { %755 = dma.vmem_to_hbm [thread:$0]  %s753_s25, 192, %s1131_s3, [#allocation4]  }
 0x18a   :  { %835 = dma.done.wait [#allocation4], 192  }
 0x18b   :  { %836 = vsyncadd [#allocation4], 4294967104 }
 0x18c   :  { %759 = vsyncpa [#allocation3], 1 }
 0x18d   :  { %760 = vsyncpa [#allocation6], 1 }
 0x18e   :  { %761 = vsyncpa [#allocation4], 1 }

</bundles_post_ra>
